<compile_context>
chip_gen: v7x
topology: tpu7x:2x2x1
jax: 0.10.0
libtpu: 0.0.40
codegen_flags: <defaults>
</compile_context>

<pallas_src>
import jax
import jax.numpy as jnp
from jax.experimental import pallas as pl
from jax.experimental.pallas import tpu as pltpu


# ---- packed 1-D f32 SMEM parameter slab (length 64) -------------------------
#   [_W1 : _W1+12)  W1^T flattened row-major: w1t[k, j] at _W1 + k*4 + j  (3x4)
#   [_B1 : _B1+4)   fc1 bias
#   [_G  : _G +4)   BatchNorm gamma
#   [_BE : _BE+4)   BatchNorm beta
#   [_W2 : _W2+24)  W2^T flattened row-major: w2t[j, i] at _W2 + j*6 + i  (4x6)
#   [_B2 : _B2+6)   fc2 bias
_W1, _B1, _G, _BE, _W2, _B2 = 0, 12, 16, 20, 24, 48
_EPS = 1e-5


def actor_mlp_kernel(obs_ref, par_ref, noise_ref, logit_ref, action_ref):
    """Whole forward pass, lane-dense (features, B) layout, pure VPU/EUP."""
    # obs rows, each (1, B) and lane-dense along the batch.
    x = [obs_ref[k:k + 1, :] for k in range(3)]

    # ----- fc1 (3 -> 4): unrolled scalar-broadcast FMAs (MXU skipped) --------
    h = []
    for j in range(4):
        acc = x[0] * par_ref[_W1 + 0 * 4 + j] + par_ref[_B1 + j]
        acc = acc + x[1] * par_ref[_W1 + 1 * 4 + j]
        acc = acc + x[2] * par_ref[_W1 + 2 * 4 + j]
        h.append(acc)                                          # (1, B)

    # ----- BatchNorm1d (training mode, biased two-pass var) + ReLU -----------
    a = []
    for j in range(4):
        hj = h[j]
        mean = jnp.mean(hj, axis=1, keepdims=True)             # (1, 1)
        var = jnp.mean((hj - mean) * (hj - mean), axis=1, keepdims=True)
        scale = par_ref[_G + j] * jax.lax.rsqrt(var + _EPS)
        shift = par_ref[_BE + j] - mean * scale
        a.append(jnp.maximum(hj * scale + shift, 0.0))         # (1, B)

    # ----- fc2 (4 -> 6): unrolled FMAs + ReLU --------------------------------
    z = []
    for i in range(6):
        acc = a[0] * par_ref[_W2 + 0 * 6 + i] + par_ref[_B2 + i]
        acc = acc + a[1] * par_ref[_W2 + 1 * 6 + i]
        acc = acc + a[2] * par_ref[_W2 + 2 * 6 + i]
        acc = acc + a[3] * par_ref[_W2 + 3 * 6 + i]
        z.append(jnp.maximum(acc, 0.0))                        # (1, B)

    # ----- Softmax over the 6 feature rows (per batch column) ----------------
    # In this layout the softmax axis is across the row list: per-lane max /
    # sum, no cross-lane reductions at all.
    z_max = z[0]
    for i in range(1, 6):
        z_max = jnp.maximum(z_max, z[i])
    e = [jnp.exp(zi - z_max) for zi in z]
    denom = e[0]
    for i in range(1, 6):
        denom = denom + e[i]
    inv = 1.0 / denom                                          # exact

    probs = jnp.concatenate([ei * inv for ei in e], axis=0)    # (6, B)

    # ----- two lane-dense output slabs ---------------------------------------
    logit_ref[...] = probs
    action_ref[...] = probs + noise_ref[...]


def prepare_params(params):
    """One-time packing of all weights into a single 1-D (64,) f32 SMEM slab.

    PyTorch stores Linear weight as (out, in); we store (in, out) flattened.
    """
    w1t = params['fc1_w'].T.astype(jnp.float32)          # (3, 4)
    b1 = params['fc1_b'].astype(jnp.float32)              # (4,)
    gamma = params['bn1_w'].astype(jnp.float32)           # (4,)
    beta = params['bn1_b'].astype(jnp.float32)            # (4,)
    w2t = params['fc2_w'].T.astype(jnp.float32)           # (4, 6)
    b2 = params['fc2_b'].astype(jnp.float32)               # (6,)

    slab = jnp.zeros((64,), jnp.float32)
    slab = slab.at[_W1:_W1 + 12].set(w1t.reshape(-1))
    slab = slab.at[_B1:_B1 + 4].set(b1)
    slab = slab.at[_G:_G + 4].set(gamma)
    slab = slab.at[_BE:_BE + 4].set(beta)
    slab = slab.at[_W2:_W2 + 24].set(w2t.reshape(-1))
    slab = slab.at[_B2:_B2 + 6].set(b2)
    return slab


def actor_mlp_forward(packed_params, inputs, tmp=0, *, noise_key=None):
    """JAX wrapper mirroring ActorMLP.forward (dict in / dict out)."""
    obs = inputs['obs'].astype(jnp.float32)               # (B, 3)
    B = obs.shape[0]
    obs_t = obs.T                                          # (3, B) lane-dense

    if noise_key is None:
        noise_key = jax.random.PRNGKey(0)
    # torch.rand_like -> U[0, 1) noise, generated wrapper-side (lane-dense).
    noise = jax.random.uniform(noise_key, (6, B), jnp.float32)

    vmem = pl.BlockSpec(memory_space=pltpu.MemorySpace.VMEM)
    smem = pl.BlockSpec(memory_space=pltpu.MemorySpace.SMEM)

    logit_t, action_t = pl.pallas_call(
        actor_mlp_kernel,
        out_shape=(jax.ShapeDtypeStruct((6, B), jnp.float32),
                   jax.ShapeDtypeStruct((6, B), jnp.float32)),
        in_specs=[vmem, smem, vmem],
        out_specs=(vmem, vmem),
    )(obs_t, packed_params, noise)

    ret = {'logit': logit_t.T, 'tmp': tmp, 'action': action_t.T}
    if 'mask' in inputs:
        ret['action_mask'] = inputs['mask']
    return ret


def init_params(key):
    """Deterministic parameter init matching the module's shapes."""
    k1, k2, k3, k4, k5, k6 = jax.random.split(key, 6)
    return {
        'fc1_w': jax.random.normal(k1, (4, 3), jnp.float32) * 0.5,   # (out, in)
        'fc1_b': jax.random.normal(k2, (4,), jnp.float32) * 0.1,
        'bn1_w': 1.0 + 0.1 * jax.random.normal(k5, (4,), jnp.float32),  # gamma
        'bn1_b': 0.1 * jax.random.normal(k6, (4,), jnp.float32),        # beta
        'fc2_w': jax.random.normal(k3, (6, 4), jnp.float32) * 0.5,   # (out, in)
        'fc2_b': jax.random.normal(k4, (6,), jnp.float32) * 0.1,
    }


def _reference_logit(params, obs):
    """Pure-JAX reference for the deterministic part (post-softmax probs)."""
    x = obs @ params['fc1_w'].T + params['fc1_b']
    mean = jnp.mean(x, axis=0, keepdims=True)
    var = jnp.mean((x - mean) ** 2, axis=0, keepdims=True)
    x = (x - mean) * jax.lax.rsqrt(var + 1e-5)
    x = x * params['bn1_w'] + params['bn1_b']
    x = jnp.maximum(x, 0.0)
    x = x @ params['fc2_w'].T + params['fc2_b']
    x = jnp.maximum(x, 0.0)
    return jax.nn.softmax(x, axis=-1)


if __name__ == "__main__":
    key = jax.random.PRNGKey(0)
    pkey, okey, mkey, nkey = jax.random.split(key, 4)

    B = 8
    params = init_params(pkey)
    packed = prepare_params(params)          # one-time packing (hoisted)
    inputs = {
        'obs': jax.random.normal(okey, (B, 3), jnp.float32),
        'mask': (jax.random.uniform(mkey, (B, 6)) > 0.5).astype(jnp.float32),
    }

    out = actor_mlp_forward(packed, inputs, tmp=0, noise_key=nkey)
    jax.block_until_ready(out['logit'])
    jax.block_until_ready(out['action'])

    # sanity: softmax rows sum to ~1 (exact reciprocal now)
    row_sums = jnp.sum(out['logit'], axis=-1)
    assert jnp.allclose(row_sums, jnp.ones_like(row_sums), atol=1e-4)
    # sanity: matches pure-JAX reference of the full module math
    ref = _reference_logit(params, inputs['obs'])
    assert jnp.allclose(out['logit'], ref, atol=1e-4, rtol=1e-4)
    # sanity: action = logit + U[0,1)
    assert bool(jnp.all(out['action'] >= out['logit'] - 1e-6))
    assert bool(jnp.all(out['action'] < out['logit'] + 1.0))
    assert out['logit'].shape == (B, 6)
    assert out['action'].shape == (B, 6)
    assert 'action_mask' in out

    print("KERNEL_OK")
</pallas_src>

<mosaic_0001>
module attributes {stable_mosaic.version = 11 : i64} {
  func.func @actor_mlp_kernel(%arg0: memref<3x8xf32, #tpu.memory_space<vmem>>, %arg1: memref<64xf32, #tpu.memory_space<smem>>, %arg2: memref<6x8xf32, #tpu.memory_space<vmem>>, %arg3: memref<6x8xf32, #tpu.memory_space<vmem>>, %arg4: memref<6x8xf32, #tpu.memory_space<vmem>>) attributes {dimension_semantics = [], scalar_prefetch = 0 : i64, scratch_operands = 0 : i64, tpu.core_type = #tpu.core_type<tc>} {
    %c0 = arith.constant 0 : index
    %c0_0 = arith.constant 0 : index
    %0 = vector.load %arg0[%c0, %c0_0] : memref<3x8xf32, #tpu.memory_space<vmem>>, vector<1x8xf32>
    %c1 = arith.constant 1 : index
    %c0_1 = arith.constant 0 : index
    %1 = vector.load %arg0[%c1, %c0_1] : memref<3x8xf32, #tpu.memory_space<vmem>>, vector<1x8xf32>
    %c2 = arith.constant 2 : index
    %c0_2 = arith.constant 0 : index
    %2 = vector.load %arg0[%c2, %c0_2] : memref<3x8xf32, #tpu.memory_space<vmem>>, vector<1x8xf32>
    %c0_3 = arith.constant 0 : index
    %3 = memref.load %arg1[%c0_3] : memref<64xf32, #tpu.memory_space<smem>>
    %4 = vector.broadcast %3 : f32 to vector<1x8xf32>
    %5 = arith.mulf %0, %4 : vector<1x8xf32>
    %c12 = arith.constant 12 : index
    %6 = memref.load %arg1[%c12] : memref<64xf32, #tpu.memory_space<smem>>
    %7 = vector.broadcast %6 : f32 to vector<1x8xf32>
    %8 = arith.addf %5, %7 : vector<1x8xf32>
    %c4 = arith.constant 4 : index
    %9 = memref.load %arg1[%c4] : memref<64xf32, #tpu.memory_space<smem>>
    %10 = vector.broadcast %9 : f32 to vector<1x8xf32>
    %11 = arith.mulf %1, %10 : vector<1x8xf32>
    %12 = arith.addf %8, %11 : vector<1x8xf32>
    %c8 = arith.constant 8 : index
    %13 = memref.load %arg1[%c8] : memref<64xf32, #tpu.memory_space<smem>>
    %14 = vector.broadcast %13 : f32 to vector<1x8xf32>
    %15 = arith.mulf %2, %14 : vector<1x8xf32>
    %16 = arith.addf %12, %15 : vector<1x8xf32>
    %c1_4 = arith.constant 1 : index
    %17 = memref.load %arg1[%c1_4] : memref<64xf32, #tpu.memory_space<smem>>
    %18 = vector.broadcast %17 : f32 to vector<1x8xf32>
    %19 = arith.mulf %0, %18 : vector<1x8xf32>
    %c13 = arith.constant 13 : index
    %20 = memref.load %arg1[%c13] : memref<64xf32, #tpu.memory_space<smem>>
    %21 = vector.broadcast %20 : f32 to vector<1x8xf32>
    %22 = arith.addf %19, %21 : vector<1x8xf32>
    %c5 = arith.constant 5 : index
    %23 = memref.load %arg1[%c5] : memref<64xf32, #tpu.memory_space<smem>>
    %24 = vector.broadcast %23 : f32 to vector<1x8xf32>
    %25 = arith.mulf %1, %24 : vector<1x8xf32>
    %26 = arith.addf %22, %25 : vector<1x8xf32>
    %c9 = arith.constant 9 : index
    %27 = memref.load %arg1[%c9] : memref<64xf32, #tpu.memory_space<smem>>
    %28 = vector.broadcast %27 : f32 to vector<1x8xf32>
    %29 = arith.mulf %2, %28 : vector<1x8xf32>
    %30 = arith.addf %26, %29 : vector<1x8xf32>
    %c2_5 = arith.constant 2 : index
    %31 = memref.load %arg1[%c2_5] : memref<64xf32, #tpu.memory_space<smem>>
    %32 = vector.broadcast %31 : f32 to vector<1x8xf32>
    %33 = arith.mulf %0, %32 : vector<1x8xf32>
    %c14 = arith.constant 14 : index
    %34 = memref.load %arg1[%c14] : memref<64xf32, #tpu.memory_space<smem>>
    %35 = vector.broadcast %34 : f32 to vector<1x8xf32>
    %36 = arith.addf %33, %35 : vector<1x8xf32>
    %c6 = arith.constant 6 : index
    %37 = memref.load %arg1[%c6] : memref<64xf32, #tpu.memory_space<smem>>
    %38 = vector.broadcast %37 : f32 to vector<1x8xf32>
    %39 = arith.mulf %1, %38 : vector<1x8xf32>
    %40 = arith.addf %36, %39 : vector<1x8xf32>
    %c10 = arith.constant 10 : index
    %41 = memref.load %arg1[%c10] : memref<64xf32, #tpu.memory_space<smem>>
    %42 = vector.broadcast %41 : f32 to vector<1x8xf32>
    %43 = arith.mulf %2, %42 : vector<1x8xf32>
    %44 = arith.addf %40, %43 : vector<1x8xf32>
    %c3 = arith.constant 3 : index
    %45 = memref.load %arg1[%c3] : memref<64xf32, #tpu.memory_space<smem>>
    %46 = vector.broadcast %45 : f32 to vector<1x8xf32>
    %47 = arith.mulf %0, %46 : vector<1x8xf32>
    %c15 = arith.constant 15 : index
    %48 = memref.load %arg1[%c15] : memref<64xf32, #tpu.memory_space<smem>>
    %49 = vector.broadcast %48 : f32 to vector<1x8xf32>
    %50 = arith.addf %47, %49 : vector<1x8xf32>
    %c7 = arith.constant 7 : index
    %51 = memref.load %arg1[%c7] : memref<64xf32, #tpu.memory_space<smem>>
    %52 = vector.broadcast %51 : f32 to vector<1x8xf32>
    %53 = arith.mulf %1, %52 : vector<1x8xf32>
    %54 = arith.addf %50, %53 : vector<1x8xf32>
    %c11 = arith.constant 11 : index
    %55 = memref.load %arg1[%c11] : memref<64xf32, #tpu.memory_space<smem>>
    %56 = vector.broadcast %55 : f32 to vector<1x8xf32>
    %57 = arith.mulf %2, %56 : vector<1x8xf32>
    %58 = arith.addf %54, %57 : vector<1x8xf32>
    %cst = arith.constant dense<0.000000e+00> : vector<1xf32>
    %59 = vector.multi_reduction <add>, %16, %cst [1] : vector<1x8xf32> to vector<1xf32>
    %60 = vector.shape_cast %59 : vector<1xf32> to vector<1x1xf32>
    %cst_6 = arith.constant 8.000000e+00 : f32
    %61 = vector.broadcast %cst_6 : f32 to vector<1x1xf32>
    %62 = arith.divf %60, %61 : vector<1x1xf32>
    %63 = vector.broadcast %62 : vector<1x1xf32> to vector<1x8xf32>
    %64 = arith.subf %16, %63 : vector<1x8xf32>
    %65 = vector.broadcast %62 : vector<1x1xf32> to vector<1x8xf32>
    %66 = arith.subf %16, %65 : vector<1x8xf32>
    %67 = arith.mulf %64, %66 : vector<1x8xf32>
    %cst_7 = arith.constant dense<0.000000e+00> : vector<1xf32>
    %68 = vector.multi_reduction <add>, %67, %cst_7 [1] : vector<1x8xf32> to vector<1xf32>
    %69 = vector.shape_cast %68 : vector<1xf32> to vector<1x1xf32>
    %cst_8 = arith.constant 8.000000e+00 : f32
    %70 = vector.broadcast %cst_8 : f32 to vector<1x1xf32>
    %71 = arith.divf %69, %70 : vector<1x1xf32>
    %c16 = arith.constant 16 : index
    %72 = memref.load %arg1[%c16] : memref<64xf32, #tpu.memory_space<smem>>
    %cst_9 = arith.constant 9.99999974E-6 : f32
    %73 = vector.broadcast %cst_9 : f32 to vector<1x1xf32>
    %74 = arith.addf %71, %73 : vector<1x1xf32>
    %75 = math.rsqrt %74 : vector<1x1xf32>
    %76 = vector.broadcast %72 : f32 to vector<1x1xf32>
    %77 = arith.mulf %76, %75 : vector<1x1xf32>
    %c20 = arith.constant 20 : index
    %78 = memref.load %arg1[%c20] : memref<64xf32, #tpu.memory_space<smem>>
    %79 = arith.mulf %62, %77 : vector<1x1xf32>
    %80 = vector.broadcast %78 : f32 to vector<1x1xf32>
    %81 = arith.subf %80, %79 : vector<1x1xf32>
    %82 = vector.broadcast %77 : vector<1x1xf32> to vector<1x8xf32>
    %83 = arith.mulf %16, %82 : vector<1x8xf32>
    %84 = vector.broadcast %81 : vector<1x1xf32> to vector<1x8xf32>
    %85 = arith.addf %83, %84 : vector<1x8xf32>
    %cst_10 = arith.constant 0.000000e+00 : f32
    %86 = vector.broadcast %cst_10 : f32 to vector<1x8xf32>
    %87 = arith.maximumf %85, %86 : vector<1x8xf32>
    %cst_11 = arith.constant dense<0.000000e+00> : vector<1xf32>
    %88 = vector.multi_reduction <add>, %30, %cst_11 [1] : vector<1x8xf32> to vector<1xf32>
    %89 = vector.shape_cast %88 : vector<1xf32> to vector<1x1xf32>
    %cst_12 = arith.constant 8.000000e+00 : f32
    %90 = vector.broadcast %cst_12 : f32 to vector<1x1xf32>
    %91 = arith.divf %89, %90 : vector<1x1xf32>
    %92 = vector.broadcast %91 : vector<1x1xf32> to vector<1x8xf32>
    %93 = arith.subf %30, %92 : vector<1x8xf32>
    %94 = vector.broadcast %91 : vector<1x1xf32> to vector<1x8xf32>
    %95 = arith.subf %30, %94 : vector<1x8xf32>
    %96 = arith.mulf %93, %95 : vector<1x8xf32>
    %cst_13 = arith.constant dense<0.000000e+00> : vector<1xf32>
    %97 = vector.multi_reduction <add>, %96, %cst_13 [1] : vector<1x8xf32> to vector<1xf32>
    %98 = vector.shape_cast %97 : vector<1xf32> to vector<1x1xf32>
    %cst_14 = arith.constant 8.000000e+00 : f32
    %99 = vector.broadcast %cst_14 : f32 to vector<1x1xf32>
    %100 = arith.divf %98, %99 : vector<1x1xf32>
    %c17 = arith.constant 17 : index
    %101 = memref.load %arg1[%c17] : memref<64xf32, #tpu.memory_space<smem>>
    %cst_15 = arith.constant 9.99999974E-6 : f32
    %102 = vector.broadcast %cst_15 : f32 to vector<1x1xf32>
    %103 = arith.addf %100, %102 : vector<1x1xf32>
    %104 = math.rsqrt %103 : vector<1x1xf32>
    %105 = vector.broadcast %101 : f32 to vector<1x1xf32>
    %106 = arith.mulf %105, %104 : vector<1x1xf32>
    %c21 = arith.constant 21 : index
    %107 = memref.load %arg1[%c21] : memref<64xf32, #tpu.memory_space<smem>>
    %108 = arith.mulf %91, %106 : vector<1x1xf32>
    %109 = vector.broadcast %107 : f32 to vector<1x1xf32>
    %110 = arith.subf %109, %108 : vector<1x1xf32>
    %111 = vector.broadcast %106 : vector<1x1xf32> to vector<1x8xf32>
    %112 = arith.mulf %30, %111 : vector<1x8xf32>
    %113 = vector.broadcast %110 : vector<1x1xf32> to vector<1x8xf32>
    %114 = arith.addf %112, %113 : vector<1x8xf32>
    %cst_16 = arith.constant 0.000000e+00 : f32
    %115 = vector.broadcast %cst_16 : f32 to vector<1x8xf32>
    %116 = arith.maximumf %114, %115 : vector<1x8xf32>
    %cst_17 = arith.constant dense<0.000000e+00> : vector<1xf32>
    %117 = vector.multi_reduction <add>, %44, %cst_17 [1] : vector<1x8xf32> to vector<1xf32>
    %118 = vector.shape_cast %117 : vector<1xf32> to vector<1x1xf32>
    %cst_18 = arith.constant 8.000000e+00 : f32
    %119 = vector.broadcast %cst_18 : f32 to vector<1x1xf32>
    %120 = arith.divf %118, %119 : vector<1x1xf32>
    %121 = vector.broadcast %120 : vector<1x1xf32> to vector<1x8xf32>
    %122 = arith.subf %44, %121 : vector<1x8xf32>
    %123 = vector.broadcast %120 : vector<1x1xf32> to vector<1x8xf32>
    %124 = arith.subf %44, %123 : vector<1x8xf32>
    %125 = arith.mulf %122, %124 : vector<1x8xf32>
    %cst_19 = arith.constant dense<0.000000e+00> : vector<1xf32>
    %126 = vector.multi_reduction <add>, %125, %cst_19 [1] : vector<1x8xf32> to vector<1xf32>
    %127 = vector.shape_cast %126 : vector<1xf32> to vector<1x1xf32>
    %cst_20 = arith.constant 8.000000e+00 : f32
    %128 = vector.broadcast %cst_20 : f32 to vector<1x1xf32>
    %129 = arith.divf %127, %128 : vector<1x1xf32>
    %c18 = arith.constant 18 : index
    %130 = memref.load %arg1[%c18] : memref<64xf32, #tpu.memory_space<smem>>
    %cst_21 = arith.constant 9.99999974E-6 : f32
    %131 = vector.broadcast %cst_21 : f32 to vector<1x1xf32>
    %132 = arith.addf %129, %131 : vector<1x1xf32>
    %133 = math.rsqrt %132 : vector<1x1xf32>
    %134 = vector.broadcast %130 : f32 to vector<1x1xf32>
    %135 = arith.mulf %134, %133 : vector<1x1xf32>
    %c22 = arith.constant 22 : index
    %136 = memref.load %arg1[%c22] : memref<64xf32, #tpu.memory_space<smem>>
    %137 = arith.mulf %120, %135 : vector<1x1xf32>
    %138 = vector.broadcast %136 : f32 to vector<1x1xf32>
    %139 = arith.subf %138, %137 : vector<1x1xf32>
    %140 = vector.broadcast %135 : vector<1x1xf32> to vector<1x8xf32>
    %141 = arith.mulf %44, %140 : vector<1x8xf32>
    %142 = vector.broadcast %139 : vector<1x1xf32> to vector<1x8xf32>
    %143 = arith.addf %141, %142 : vector<1x8xf32>
    %cst_22 = arith.constant 0.000000e+00 : f32
    %144 = vector.broadcast %cst_22 : f32 to vector<1x8xf32>
    %145 = arith.maximumf %143, %144 : vector<1x8xf32>
    %cst_23 = arith.constant dense<0.000000e+00> : vector<1xf32>
    %146 = vector.multi_reduction <add>, %58, %cst_23 [1] : vector<1x8xf32> to vector<1xf32>
    %147 = vector.shape_cast %146 : vector<1xf32> to vector<1x1xf32>
    %cst_24 = arith.constant 8.000000e+00 : f32
    %148 = vector.broadcast %cst_24 : f32 to vector<1x1xf32>
    %149 = arith.divf %147, %148 : vector<1x1xf32>
    %150 = vector.broadcast %149 : vector<1x1xf32> to vector<1x8xf32>
    %151 = arith.subf %58, %150 : vector<1x8xf32>
    %152 = vector.broadcast %149 : vector<1x1xf32> to vector<1x8xf32>
    %153 = arith.subf %58, %152 : vector<1x8xf32>
    %154 = arith.mulf %151, %153 : vector<1x8xf32>
    %cst_25 = arith.constant dense<0.000000e+00> : vector<1xf32>
    %155 = vector.multi_reduction <add>, %154, %cst_25 [1] : vector<1x8xf32> to vector<1xf32>
    %156 = vector.shape_cast %155 : vector<1xf32> to vector<1x1xf32>
    %cst_26 = arith.constant 8.000000e+00 : f32
    %157 = vector.broadcast %cst_26 : f32 to vector<1x1xf32>
    %158 = arith.divf %156, %157 : vector<1x1xf32>
    %c19 = arith.constant 19 : index
    %159 = memref.load %arg1[%c19] : memref<64xf32, #tpu.memory_space<smem>>
    %cst_27 = arith.constant 9.99999974E-6 : f32
    %160 = vector.broadcast %cst_27 : f32 to vector<1x1xf32>
    %161 = arith.addf %158, %160 : vector<1x1xf32>
    %162 = math.rsqrt %161 : vector<1x1xf32>
    %163 = vector.broadcast %159 : f32 to vector<1x1xf32>
    %164 = arith.mulf %163, %162 : vector<1x1xf32>
    %c23 = arith.constant 23 : index
    %165 = memref.load %arg1[%c23] : memref<64xf32, #tpu.memory_space<smem>>
    %166 = arith.mulf %149, %164 : vector<1x1xf32>
    %167 = vector.broadcast %165 : f32 to vector<1x1xf32>
    %168 = arith.subf %167, %166 : vector<1x1xf32>
    %169 = vector.broadcast %164 : vector<1x1xf32> to vector<1x8xf32>
    %170 = arith.mulf %58, %169 : vector<1x8xf32>
    %171 = vector.broadcast %168 : vector<1x1xf32> to vector<1x8xf32>
    %172 = arith.addf %170, %171 : vector<1x8xf32>
    %cst_28 = arith.constant 0.000000e+00 : f32
    %173 = vector.broadcast %cst_28 : f32 to vector<1x8xf32>
    %174 = arith.maximumf %172, %173 : vector<1x8xf32>
    %c24 = arith.constant 24 : index
    %175 = memref.load %arg1[%c24] : memref<64xf32, #tpu.memory_space<smem>>
    %176 = vector.broadcast %175 : f32 to vector<1x8xf32>
    %177 = arith.mulf %87, %176 : vector<1x8xf32>
    %c48 = arith.constant 48 : index
    %178 = memref.load %arg1[%c48] : memref<64xf32, #tpu.memory_space<smem>>
    %179 = vector.broadcast %178 : f32 to vector<1x8xf32>
    %180 = arith.addf %177, %179 : vector<1x8xf32>
    %c30 = arith.constant 30 : index
    %181 = memref.load %arg1[%c30] : memref<64xf32, #tpu.memory_space<smem>>
    %182 = vector.broadcast %181 : f32 to vector<1x8xf32>
    %183 = arith.mulf %116, %182 : vector<1x8xf32>
    %184 = arith.addf %180, %183 : vector<1x8xf32>
    %c36 = arith.constant 36 : index
    %185 = memref.load %arg1[%c36] : memref<64xf32, #tpu.memory_space<smem>>
    %186 = vector.broadcast %185 : f32 to vector<1x8xf32>
    %187 = arith.mulf %145, %186 : vector<1x8xf32>
    %188 = arith.addf %184, %187 : vector<1x8xf32>
    %c42 = arith.constant 42 : index
    %189 = memref.load %arg1[%c42] : memref<64xf32, #tpu.memory_space<smem>>
    %190 = vector.broadcast %189 : f32 to vector<1x8xf32>
    %191 = arith.mulf %174, %190 : vector<1x8xf32>
    %192 = arith.addf %188, %191 : vector<1x8xf32>
    %cst_29 = arith.constant 0.000000e+00 : f32
    %193 = vector.broadcast %cst_29 : f32 to vector<1x8xf32>
    %194 = arith.maximumf %192, %193 : vector<1x8xf32>
    %c25 = arith.constant 25 : index
    %195 = memref.load %arg1[%c25] : memref<64xf32, #tpu.memory_space<smem>>
    %196 = vector.broadcast %195 : f32 to vector<1x8xf32>
    %197 = arith.mulf %87, %196 : vector<1x8xf32>
    %c49 = arith.constant 49 : index
    %198 = memref.load %arg1[%c49] : memref<64xf32, #tpu.memory_space<smem>>
    %199 = vector.broadcast %198 : f32 to vector<1x8xf32>
    %200 = arith.addf %197, %199 : vector<1x8xf32>
    %c31 = arith.constant 31 : index
    %201 = memref.load %arg1[%c31] : memref<64xf32, #tpu.memory_space<smem>>
    %202 = vector.broadcast %201 : f32 to vector<1x8xf32>
    %203 = arith.mulf %116, %202 : vector<1x8xf32>
    %204 = arith.addf %200, %203 : vector<1x8xf32>
    %c37 = arith.constant 37 : index
    %205 = memref.load %arg1[%c37] : memref<64xf32, #tpu.memory_space<smem>>
    %206 = vector.broadcast %205 : f32 to vector<1x8xf32>
    %207 = arith.mulf %145, %206 : vector<1x8xf32>
    %208 = arith.addf %204, %207 : vector<1x8xf32>
    %c43 = arith.constant 43 : index
    %209 = memref.load %arg1[%c43] : memref<64xf32, #tpu.memory_space<smem>>
    %210 = vector.broadcast %209 : f32 to vector<1x8xf32>
    %211 = arith.mulf %174, %210 : vector<1x8xf32>
    %212 = arith.addf %208, %211 : vector<1x8xf32>
    %cst_30 = arith.constant 0.000000e+00 : f32
    %213 = vector.broadcast %cst_30 : f32 to vector<1x8xf32>
    %214 = arith.maximumf %212, %213 : vector<1x8xf32>
    %c26 = arith.constant 26 : index
    %215 = memref.load %arg1[%c26] : memref<64xf32, #tpu.memory_space<smem>>
    %216 = vector.broadcast %215 : f32 to vector<1x8xf32>
    %217 = arith.mulf %87, %216 : vector<1x8xf32>
    %c50 = arith.constant 50 : index
    %218 = memref.load %arg1[%c50] : memref<64xf32, #tpu.memory_space<smem>>
    %219 = vector.broadcast %218 : f32 to vector<1x8xf32>
    %220 = arith.addf %217, %219 : vector<1x8xf32>
    %c32 = arith.constant 32 : index
    %221 = memref.load %arg1[%c32] : memref<64xf32, #tpu.memory_space<smem>>
    %222 = vector.broadcast %221 : f32 to vector<1x8xf32>
    %223 = arith.mulf %116, %222 : vector<1x8xf32>
    %224 = arith.addf %220, %223 : vector<1x8xf32>
    %c38 = arith.constant 38 : index
    %225 = memref.load %arg1[%c38] : memref<64xf32, #tpu.memory_space<smem>>
    %226 = vector.broadcast %225 : f32 to vector<1x8xf32>
    %227 = arith.mulf %145, %226 : vector<1x8xf32>
    %228 = arith.addf %224, %227 : vector<1x8xf32>
    %c44 = arith.constant 44 : index
    %229 = memref.load %arg1[%c44] : memref<64xf32, #tpu.memory_space<smem>>
    %230 = vector.broadcast %229 : f32 to vector<1x8xf32>
    %231 = arith.mulf %174, %230 : vector<1x8xf32>
    %232 = arith.addf %228, %231 : vector<1x8xf32>
    %cst_31 = arith.constant 0.000000e+00 : f32
    %233 = vector.broadcast %cst_31 : f32 to vector<1x8xf32>
    %234 = arith.maximumf %232, %233 : vector<1x8xf32>
    %c27 = arith.constant 27 : index
    %235 = memref.load %arg1[%c27] : memref<64xf32, #tpu.memory_space<smem>>
    %236 = vector.broadcast %235 : f32 to vector<1x8xf32>
    %237 = arith.mulf %87, %236 : vector<1x8xf32>
    %c51 = arith.constant 51 : index
    %238 = memref.load %arg1[%c51] : memref<64xf32, #tpu.memory_space<smem>>
    %239 = vector.broadcast %238 : f32 to vector<1x8xf32>
    %240 = arith.addf %237, %239 : vector<1x8xf32>
    %c33 = arith.constant 33 : index
    %241 = memref.load %arg1[%c33] : memref<64xf32, #tpu.memory_space<smem>>
    %242 = vector.broadcast %241 : f32 to vector<1x8xf32>
    %243 = arith.mulf %116, %242 : vector<1x8xf32>
    %244 = arith.addf %240, %243 : vector<1x8xf32>
    %c39 = arith.constant 39 : index
    %245 = memref.load %arg1[%c39] : memref<64xf32, #tpu.memory_space<smem>>
    %246 = vector.broadcast %245 : f32 to vector<1x8xf32>
    %247 = arith.mulf %145, %246 : vector<1x8xf32>
    %248 = arith.addf %244, %247 : vector<1x8xf32>
    %c45 = arith.constant 45 : index
    %249 = memref.load %arg1[%c45] : memref<64xf32, #tpu.memory_space<smem>>
    %250 = vector.broadcast %249 : f32 to vector<1x8xf32>
    %251 = arith.mulf %174, %250 : vector<1x8xf32>
    %252 = arith.addf %248, %251 : vector<1x8xf32>
    %cst_32 = arith.constant 0.000000e+00 : f32
    %253 = vector.broadcast %cst_32 : f32 to vector<1x8xf32>
    %254 = arith.maximumf %252, %253 : vector<1x8xf32>
    %c28 = arith.constant 28 : index
    %255 = memref.load %arg1[%c28] : memref<64xf32, #tpu.memory_space<smem>>
    %256 = vector.broadcast %255 : f32 to vector<1x8xf32>
    %257 = arith.mulf %87, %256 : vector<1x8xf32>
    %c52 = arith.constant 52 : index
    %258 = memref.load %arg1[%c52] : memref<64xf32, #tpu.memory_space<smem>>
    %259 = vector.broadcast %258 : f32 to vector<1x8xf32>
    %260 = arith.addf %257, %259 : vector<1x8xf32>
    %c34 = arith.constant 34 : index
    %261 = memref.load %arg1[%c34] : memref<64xf32, #tpu.memory_space<smem>>
    %262 = vector.broadcast %261 : f32 to vector<1x8xf32>
    %263 = arith.mulf %116, %262 : vector<1x8xf32>
    %264 = arith.addf %260, %263 : vector<1x8xf32>
    %c40 = arith.constant 40 : index
    %265 = memref.load %arg1[%c40] : memref<64xf32, #tpu.memory_space<smem>>
    %266 = vector.broadcast %265 : f32 to vector<1x8xf32>
    %267 = arith.mulf %145, %266 : vector<1x8xf32>
    %268 = arith.addf %264, %267 : vector<1x8xf32>
    %c46 = arith.constant 46 : index
    %269 = memref.load %arg1[%c46] : memref<64xf32, #tpu.memory_space<smem>>
    %270 = vector.broadcast %269 : f32 to vector<1x8xf32>
    %271 = arith.mulf %174, %270 : vector<1x8xf32>
    %272 = arith.addf %268, %271 : vector<1x8xf32>
    %cst_33 = arith.constant 0.000000e+00 : f32
    %273 = vector.broadcast %cst_33 : f32 to vector<1x8xf32>
    %274 = arith.maximumf %272, %273 : vector<1x8xf32>
    %c29 = arith.constant 29 : index
    %275 = memref.load %arg1[%c29] : memref<64xf32, #tpu.memory_space<smem>>
    %276 = vector.broadcast %275 : f32 to vector<1x8xf32>
    %277 = arith.mulf %87, %276 : vector<1x8xf32>
    %c53 = arith.constant 53 : index
    %278 = memref.load %arg1[%c53] : memref<64xf32, #tpu.memory_space<smem>>
    %279 = vector.broadcast %278 : f32 to vector<1x8xf32>
    %280 = arith.addf %277, %279 : vector<1x8xf32>
    %c35 = arith.constant 35 : index
    %281 = memref.load %arg1[%c35] : memref<64xf32, #tpu.memory_space<smem>>
    %282 = vector.broadcast %281 : f32 to vector<1x8xf32>
    %283 = arith.mulf %116, %282 : vector<1x8xf32>
    %284 = arith.addf %280, %283 : vector<1x8xf32>
    %c41 = arith.constant 41 : index
    %285 = memref.load %arg1[%c41] : memref<64xf32, #tpu.memory_space<smem>>
    %286 = vector.broadcast %285 : f32 to vector<1x8xf32>
    %287 = arith.mulf %145, %286 : vector<1x8xf32>
    %288 = arith.addf %284, %287 : vector<1x8xf32>
    %c47 = arith.constant 47 : index
    %289 = memref.load %arg1[%c47] : memref<64xf32, #tpu.memory_space<smem>>
    %290 = vector.broadcast %289 : f32 to vector<1x8xf32>
    %291 = arith.mulf %174, %290 : vector<1x8xf32>
    %292 = arith.addf %288, %291 : vector<1x8xf32>
    %cst_34 = arith.constant 0.000000e+00 : f32
    %293 = vector.broadcast %cst_34 : f32 to vector<1x8xf32>
    %294 = arith.maximumf %292, %293 : vector<1x8xf32>
    %295 = arith.maximumf %194, %214 : vector<1x8xf32>
    %296 = arith.maximumf %295, %234 : vector<1x8xf32>
    %297 = arith.maximumf %296, %254 : vector<1x8xf32>
    %298 = arith.maximumf %297, %274 : vector<1x8xf32>
    %299 = arith.maximumf %298, %294 : vector<1x8xf32>
    %300 = arith.subf %194, %299 : vector<1x8xf32>
    %301 = math.exp %300 : vector<1x8xf32>
    %302 = arith.subf %214, %299 : vector<1x8xf32>
    %303 = math.exp %302 : vector<1x8xf32>
    %304 = arith.subf %234, %299 : vector<1x8xf32>
    %305 = math.exp %304 : vector<1x8xf32>
    %306 = arith.subf %254, %299 : vector<1x8xf32>
    %307 = math.exp %306 : vector<1x8xf32>
    %308 = arith.subf %274, %299 : vector<1x8xf32>
    %309 = math.exp %308 : vector<1x8xf32>
    %310 = arith.subf %294, %299 : vector<1x8xf32>
    %311 = math.exp %310 : vector<1x8xf32>
    %312 = arith.addf %301, %303 : vector<1x8xf32>
    %313 = arith.addf %312, %305 : vector<1x8xf32>
    %314 = arith.addf %313, %307 : vector<1x8xf32>
    %315 = arith.addf %314, %309 : vector<1x8xf32>
    %316 = arith.addf %315, %311 : vector<1x8xf32>
    %cst_35 = arith.constant 1.000000e+00 : f32
    %317 = vector.broadcast %cst_35 : f32 to vector<1x8xf32>
    %318 = arith.divf %317, %316 : vector<1x8xf32>
    %319 = arith.mulf %301, %318 : vector<1x8xf32>
    %320 = arith.mulf %303, %318 : vector<1x8xf32>
    %321 = arith.mulf %305, %318 : vector<1x8xf32>
    %322 = arith.mulf %307, %318 : vector<1x8xf32>
    %323 = arith.mulf %309, %318 : vector<1x8xf32>
    %324 = arith.mulf %311, %318 : vector<1x8xf32>
    %325 = tpu.concatenate %319, %320, %321, %322, %323, %324 in 0 : vector<1x8xf32>, vector<1x8xf32>, vector<1x8xf32>, vector<1x8xf32>, vector<1x8xf32>, vector<1x8xf32> -> vector<6x8xf32>
    %c0_36 = arith.constant 0 : index
    %c0_37 = arith.constant 0 : index
    %326 = vector.load %arg3[%c0_36, %c0_37] : memref<6x8xf32, #tpu.memory_space<vmem>>, vector<6x8xf32>
    tpu.vector_store %arg3[%c0_36, %c0_37], %325 {strides = array<i32>} : memref<6x8xf32, #tpu.memory_space<vmem>>, vector<6x8xf32>,
    %c0_38 = arith.constant 0 : index
    %c0_39 = arith.constant 0 : index
    %327 = vector.load %arg2[%c0_38, %c0_39] : memref<6x8xf32, #tpu.memory_space<vmem>>, vector<6x8xf32>
    %328 = arith.addf %325, %327 : vector<6x8xf32>
    %c0_40 = arith.constant 0 : index
    %c0_41 = arith.constant 0 : index
    %329 = vector.load %arg4[%c0_40, %c0_41] : memref<6x8xf32, #tpu.memory_space<vmem>>, vector<6x8xf32>
    tpu.vector_store %arg4[%c0_40, %c0_41], %328 {strides = array<i32>} : memref<6x8xf32, #tpu.memory_space<vmem>>, vector<6x8xf32>,
    return
  }
}

</mosaic_0001>

<bundles_post_ra>
// kernel: tpu_custom_call.1
= control target key start
LH: loop header
LB: loop body
LE: loop exit
PB: predicated region body
PF: predicated region fallthrough
CT: control target
= control target key end

     0   :  { %s883_s0 = inlined_call_operand.hbm [shape: f32[3,8], index: 0, kind: input, shape index: {}]   ;;  %s884_s1 = inlined_call_operand.vmem [shape: f32[64], index: 1, kind: input, shape index: {}]   ;;  %s885_s2 = inlined_call_operand.hbm [shape: f32[6,8], index: 2, kind: input, shape index: {}]   ;;  %s886_s3 = inlined_call_operand.hbm [shape: f32[6,8], index: 3, kind: output, shape index: {0}]   ;;  %s887_s4 = inlined_call_operand.hbm [shape: f32[6,8], index: 4, kind: output, shape index: {1}]  }
   0x1   :  { %890 = sst [smem:[#allocation18_spill]] %s886_s3 }
   0x2   :  { %891 = sst [smem:[#allocation19_spill]] %s887_s4 }
   0x3   :  { %10 = vsyncpa [#allocation3], 0 }
   0x4   :  { %11 = vsyncpa [#allocation5], 0 }
   0x5   :  { %12 = vsyncpa [#allocation8], 0 }
   0x6   :  { %13 = vsyncpa [#allocation4], 0 }
   0x7   :  { %14 = vsyncpa [#allocation11], 0  ;;  %s31_s17 = sshll.u32 %s884_s1, 4  ;;  %s605_s18 = smov [#allocation2]   ;;  %s32_s17 = int_to_ptr.vmem [resolvable:$true] %s31_s17 }
   0x8   :  { %s21_s19 = sshll.u32 %s605_s18, 4  ;;  %s495_s22 = scalar_lea.hbm %s883_s0, 64  ;;  %s22_s19 = int_to_ptr.vmem [resolvable:$true] %s21_s19 }
   0x9   :  { %p496_p0 = scmp.ne.s32.totalorder %s883_s0, %s495_s22  ;;  %p499_p1 = scmp.lt.u32.totalorder %s495_s22, %s883_s0 }
   0xb   :  { %p501_p2 = pnand %p499_p1, %p496_p0 }
   0xd   :  { %504 = shalt.err (!%p501_p2)
}
   0xe   :  { %s505_s27 = scalar_lea.vmem %s22_s19, 64  ;;  %p510_p4 = scmp.lt.s32.totalorder %s22_s19, %s22_s19 }
   0xf   :  { %p506_p3 = scmp.ne.s32.totalorder %s22_s19, %s505_s27  ;;  %p511_p5 = scmp.lt.s32.totalorder %s505_s27, %s505_s27 }
  0x11   :  { %p512_p6 = por %p511_p5, %p510_p4 }
  0x13   :  { %p513_p7 = pnand %p512_p6, %p506_p3 }
  0x15   :  { %516 = shalt.err (!%p513_p7)
}
  0x16   :  { %24 = dma.hbm_to_vmem [thread:$0]  %s883_s0, 64, %s22_s19, [#allocation3]  }
  0x17   :  { %s517_s29 = scalar_lea.vmem %s32_s17, 16  ;;  %p522_p9 = scmp.lt.s32.totalorder %s32_s17, %s32_s17 }
  0x18   :  { %p518_p8 = scmp.ne.s32.totalorder %s32_s17, %s517_s29  ;;  %p523_p10 = scmp.lt.s32.totalorder %s517_s29, %s517_s29 }
  0x1a   :  { %p524_p11 = por %p523_p10, %p522_p9 }
  0x1c   :  { %p525_p12 = pnand %p524_p11, %p518_p8 }
  0x1e   :  { %528 = shalt.err (!%p525_p12)
}
  0x1f   :  { %s606_s30 = smov [#allocation6]   ;;  %s607_s5 = smov [#allocation7]  }
  0x20   :  { %34 = dma.vmem_to_smem %s32_s17, 16, %s606_s30, [#allocation5]  }
  0x21   :  { %s41_s6 = sshll.u32 %s607_s5, 4  ;;  %s529_s9 = scalar_lea.hbm %s885_s2, 128  ;;  %s42_s6 = int_to_ptr.vmem [resolvable:$true] %s41_s6 }
  0x22   :  { %p530_p13 = scmp.ne.s32.totalorder %s885_s2, %s529_s9  ;;  %p533_p0 = scmp.lt.u32.totalorder %s529_s9, %s885_s2 }
  0x24   :  { %p535_p1 = pnand %p533_p0, %p530_p13 }
  0x26   :  { %538 = shalt.err (!%p535_p1)
}
  0x27   :  { %s539_s13 = scalar_lea.vmem %s42_s6, 128  ;;  %p544_p3 = scmp.lt.s32.totalorder %s42_s6, %s42_s6 }
  0x28   :  { %p540_p2 = scmp.ne.s32.totalorder %s42_s6, %s539_s13  ;;  %p545_p4 = scmp.lt.s32.totalorder %s539_s13, %s539_s13 }
  0x2a   :  { %p546_p5 = por %p545_p4, %p544_p3 }
  0x2c   :  { %p547_p6 = pnand %p546_p5, %p540_p2 }
  0x2e   :  { %550 = shalt.err (!%p547_p6)
}
  0x2f   :  { %44 = dma.hbm_to_vmem [thread:$0]  %s885_s2, 128, %s42_s6, [#allocation8]  }
  0x30   :  { %595 = dma.done.wait [#allocation3], 64  }
  0x31   :  { %596 = vsyncadd [#allocation3], 4294967232 }
  0x32   :  { %597 = dma.done.wait [#allocation5], 16  }
  0x33   :  { %598 = vsyncadd [#allocation5], 4294967280 }
  0x34   :  { %599 = dma.done.wait [#allocation8], 128  }
  0x35   :  { %600 = vsyncadd [#allocation8], 4294967168 }
  0x36   :  { %54 = sfence }
  0x37   :  { %s58_s16 = sld [smem:[#allocation6]]  ;;  %s415_s17 = sld [smem:[#allocation6 + $0xc]]  ;;  %v55_v0 = vld [vmem:[#allocation2] sm:$0x1]  ;;  %v56_v1 = vld [vmem:[#allocation2 + $0x1] sm:$0x1] }
  0x38   :  { %s416_s18 = sld [smem:[#allocation6 + $0x4]]  ;;  %s417_s19 = sld [smem:[#allocation6 + $0x8]]  ;;  %v57_v2 = vld [vmem:[#allocation2 + $0x2] sm:$0x1]  ;;  %vm114_vm0 = vcmask 57344   ;;  %vm369_vm1 = vcmask 1040384  }
  0x39   :  { %s422_s20 = sld [smem:[#allocation6 + $0x2]]  ;;  %s662_s21 = sld [smem:[#allocation6 + $0xe]]  ;;  %vm371_vm2 = vcmask 1041408   ;;  %vm373_vm3 = vcmask 1042432   ;;  %vm375_vm4 = vcmask 1043456   ;;  %vm377_vm5 = vcmask 1044480  }
  0x3a   :  { %s424_s22 = sld [smem:[#allocation6 + $0x6]]  ;;  %s425_s23 = sld [smem:[#allocation6 + $0xa]]  ;;  %vm379_vm6 = vcmask 62464  }
  0x3b   :  { %s418_s24 = sld [smem:[#allocation6 + $0x1]]  ;;  %s664_s2 = sld [smem:[#allocation6 + $0xd]] }
  0x3c   :  { %s420_s25 = sld [smem:[#allocation6 + $0x5]]  ;;  %s666_s26 = sld [smem:[#allocation6 + $0x9]] }
  0x3d   :  { %v59_v3 = vstv %s58_s16  ;;  %v62_v4 = vstv %s415_s17  ;;  %s668_s27 = sld [smem:[#allocation6 + $0x3]]  ;;  %s670_s1 = sld [smem:[#allocation6 + $0xf]] }
  0x3e   :  { %v60_v5 = vmul.f32 %v59_v3, %v55_v0  ;;  %v65_v6 = vstv %s416_s18  ;;  %v69_v7 = vstv %s417_s19  ;;  %s672_s28 = sld [smem:[#allocation6 + $0x7]]  ;;  %s674_s29 = sld [smem:[#allocation6 + $0xb]] }
  0x3f   :  { %v66_v8 = vmul.f32 %v65_v6, %v56_v1  ;;  %v70_v9 = vmul.f32 %v69_v7, %v57_v2  ;;  %v87_v10 = vstv %s422_s20  ;;  %v90_v11 = vstv %s662_s21  ;;  %s719_s30 = sld [smem:[#allocation6 + $0x10]]  ;;  %s721_s5 = sld [smem:[#allocation6 + $0x14]] }
  0x40   :  { %v63_v12 = vadd.f32 %v62_v4, %v60_v5  ;;  %v88_v13 = vmul.f32 %v87_v10, %v55_v0  ;;  %v93_v14 = vstv %s424_s22  ;;  %v97_v15 = vstv %s425_s23  ;;  %s723_s6 = sld [smem:[#allocation6 + $0x18]]  ;;  %s725_s7 = sld [smem:[#allocation6 + $0x19]] }
  0x41   :  { %v94_v16 = vmul.f32 %v93_v14, %v56_v1  ;;  %v98_v17 = vmul.f32 %v97_v15, %v57_v2  ;;  %v73_v18 = vstv %s418_s24  ;;  %v76_v19 = vstv %s664_s2  ;;  %s727_s8 = sld [smem:[#allocation6 + $0x1a]]  ;;  %s729_s9 = sld [smem:[#allocation6 + $0x11]] }
  0x42   :  { %v67_v20 = vadd.f32 %v66_v8, %v63_v12  ;;  %v91_v21 = vadd.f32 %v90_v11, %v88_v13  ;;  %v74_v22 = vmul.f32 %v73_v18, %v55_v0  ;;  %v79_v23 = vstv %s420_s25  ;;  %s731_s10 = sld [smem:[#allocation6 + $0x12]]  ;;  %s733_s11 = sld [smem:[#allocation6 + $0x15]] }
  0x43   :  { %v80_v24 = vmul.f32 %v79_v23, %v56_v1  ;;  %v83_v25 = vstv %s666_s26  ;;  %v101_v26 = vstv %s668_s27  ;;  %v104_v27 = vstv %s670_s1  ;;  %s735_s0 = sld [smem:[#allocation6 + $0x16]]  ;;  %s737_s12 = sld [smem:[#allocation6 + $0x13]] }
  0x44   :  { %v681_v28 = vadd.f32 %v70_v9, %v67_v20  ;;  %v95_v29 = vadd.f32 %v94_v16, %v91_v21  ;;  %v77_v30 = vadd.f32 %v76_v19, %v74_v22  ;;  %v84_v31 = vmul.f32 %v83_v25, %v57_v2  ;;  %s739_s13 = sld [smem:[#allocation6 + $0x1b]]  ;;  %s741_s14 = sld [smem:[#allocation6 + $0x17]] }
  0x45   :  { %v102_v32 = vmul.f32 %v101_v26, %v55_v0  ;;  %v107_v33 = vstv %s672_s28  ;;  %v111_v34 = vstv %s674_s29  ;;  %s743_s15 = sld [smem:[#allocation6 + $0x30]]  ;;  %s745_s16 = sld [smem:[#allocation6 + $0x1e]]  ;;  %v129_v15 = vstv %s719_s30 }
  0x46   :  { %v115_v35 = vsel %vm114_vm0, %v681_v28, 0.0  ;;  %v687_v36 = vadd.f32 %v98_v17, %v95_v29  ;;  %v81_v37 = vadd.f32 %v80_v24, %v77_v30  ;;  %v108_v38 = vmul.f32 %v107_v33, %v56_v1  ;;  %s747_s17 = sld [smem:[#allocation6 + $0x1f]]  ;;  %s749_s18 = sld [smem:[#allocation6 + $0x24]] }
  0x47   :  { %116 = vadd.xlane.f32.xlu0 %v115_v35  ;;  %v105_v39 = vadd.f32 %v104_v27, %v102_v32  ;;  %v112_v40 = vmul.f32 %v111_v34, %v57_v2  ;;  %s751_s19 = sld [smem:[#allocation6 + $0x31]]  ;;  %s753_s20 = sld [smem:[#allocation6 + $0x25]]  ;;  %v133_v16 = vstv %s721_s5  ;;  %v205_v17 = vstv %s723_s6 }
  0x48   :  { %v160_v41 = vsel %vm114_vm0, %v687_v36, 0.0  ;;  %v691_v42 = vadd.f32 %v84_v31, %v81_v37  ;;  %s755_s21 = sld [smem:[#allocation6 + $0x32]]  ;;  %s757_s22 = sld [smem:[#allocation6 + $0x20]]  ;;  %v224_v18 = vstv %s725_s7  ;;  %v243_v19 = vstv %s727_s8 }
  0x49   :  { %161 = vadd.xlane.f32.xlu1 %v160_v41  ;;  %v109_v43 = vadd.f32 %v108_v38, %v105_v39  ;;  %s759_s23 = sld [smem:[#allocation6 + $0x26]]  ;;  %s761_s24 = sld [smem:[#allocation6 + $0x33]]  ;;  %v151_v20 = vstv %s729_s9  ;;  %v155_v21 = vstv %s733_s11  ;;  %v173_v22 = vstv %s731_s10 }
  0x4a   :  { %v138_v44 = vsel %vm114_vm0, %v691_v42, 0.0  ;;  %s763_s2 = sld [smem:[#allocation6 + $0x2a]]  ;;  %s765_s25 = sld [smem:[#allocation6 + $0x21]]  ;;  %v177_v23 = vstv %s735_s0  ;;  %v195_v25 = vstv %s737_s12  ;;  %v199_v26 = vstv %s741_s14 }
  0x4b   :  { %139 = vadd.xlane.f32.xlu0 %v138_v44  ;;  %v695_v45 = vadd.f32 %v112_v40, %v109_v43  ;;  %s767_s26 = sld [smem:[#allocation6 + $0x2b]]  ;;  %s769_s27 = sld [smem:[#allocation6 + $0x2c]]  ;;  %v208_v27 = vstv %s743_s15  ;;  %v262_v29 = vstv %s739_s13  ;;  %v211_v31 = vstv %s745_s16 }
  0x4c   :  { %s771_s1 = sld [smem:[#allocation6 + $0x27]]  ;;  %s773_s28 = sld [smem:[#allocation6 + $0x2d]]  ;;  %v230_v32 = vstv %s747_s17  ;;  %v215_v33 = vstv %s749_s18 }
  0x4d   :  { %v182_v46 = vsel %vm114_vm0, %v695_v45, 0.0  ;;  %s777_s29 = sld [smem:[#allocation6 + $0x1c]]  ;;  %s784_s3 = sld [smem:[#allocation6 + $0x22]]  ;;  %v227_v34 = vstv %s751_s19  ;;  %v234_v35 = vstv %s753_s20 }
  0x4e   :  { %183 = vadd.xlane.f32.xlu1 %v182_v46  ;;  %s779_s4 = sld [smem:[#allocation6 + $0x34]]  ;;  %s792_s30 = sld [smem:[#allocation6 + $0x2e]]  ;;  %v246_v37 = vstv %s755_s21  ;;  %v249_v38 = vstv %s757_s22 }
  0x4f   :  { %s794_s5 = sld [smem:[#allocation6 + $0x1d]]  ;;  %s802_s11 = sld [smem:[#allocation6 + $0x23]]  ;;  %v253_v40 = vstv %s759_s23  ;;  %v265_v41 = vstv %s761_s24 }
  0x50   :  { %s800_s9 = sld [smem:[#allocation6 + $0x35]]  ;;  %s811_s0 = sld [smem:[#allocation6 + $0x29]]  ;;  %v268_v43 = vstv %s765_s25  ;;  %v219_v46 = vstv %s763_s2 }
  0x51   :  { %s813_s12 = sld [smem:[#allocation6 + $0x2f]]  ;;  %s609_s6 = smov [#allocation10]  }
  0x52   :  { %892 = sst [smem:[#allocation17_spill]] %s771_s1  ;;  %s400_s7 = sshll.u32 %s609_s6, 4  ;;  %s401_s7 = int_to_ptr.vmem [resolvable:$true] %s400_s7 }
  0x53   :  { %s786_s1 = sld [smem:[#allocation6 + $0x28]] }
  0x54   :  { %s893_s10 = sld [smem:[#allocation17_spill]] }
  0xd4   :  { %v117_v47 = vpop.xlane.xlu0 %116 }
  0xd5   :  { %v699_v48 = vmul.f32 0.125, %v117_v47  ;;  %v238_v47 = vstv %s767_s26 }
  0xd6   :  { %v162_v49 = vpop.xlane.xlu1 %161 }
  0xd7   :  { %v120_v50 = vsub.f32 %v681_v28, %v699_v48  ;;  %v703_v51 = vmul.f32 0.125, %v162_v49  ;;  %v257_v49 = vstv %s769_s27 }
  0xd8   :  { %v140_v52 = vpop.xlane.xlu0 %139 }
  0xd9   :  { %v164_v53 = vsub.f32 %v687_v36, %v703_v51  ;;  %v707_v54 = vmul.f32 0.125, %v140_v52  ;;  %v121_v55 = vmul.f32 %v120_v50, %v120_v50  ;;  %v272_v50 = vstv %s893_s10 }
  0xdb   :  { %v142_v56 = vsub.f32 %v691_v42, %v707_v54  ;;  %v184_v57 = vpop.xlane.xlu1 %183  ;;  %v122_v58 = vsel %vm114_vm0, %v121_v55, 0.0  ;;  %v165_v59 = vmul.f32 %v164_v53, %v164_v53 }
  0xdc   :  { %v712_v60 = vmul.f32 0.125, %v184_v57  ;;  %123 = vadd.xlane.f32.xlu0 %v122_v58  ;;  %v281_v58 = vstv %s777_s29 }
  0xdd   :  { %v166_v61 = vsel %vm114_vm0, %v165_v59, 0.0  ;;  %v143_v62 = vmul.f32 %v142_v56, %v142_v56  ;;  %v276_v56 = vstv %s773_s28  ;;  %v284_v59 = vstv %s779_s4 }
  0xde   :  { %v186_v63 = vsub.f32 %v695_v45, %v712_v60 }
  0xdf   :  { %v144_v0 = vsel %vm114_vm0, %v143_v62, 0.0 }
  0xe0   :  { %167 = vadd.xlane.f32.xlu0 %v166_v61  ;;  %145 = vadd.xlane.f32.xlu1 %v144_v0  ;;  %v187_v1 = vmul.f32 %v186_v63, %v186_v63  ;;  %v287_v61 = vstv %s784_s3  ;;  %v291_v0 = vstv %s786_s1  ;;  %s608_s3 = smov [#allocation9]  }
  0xe1   :  { %s390_s4 = sshll.u32 %s608_s3, 4  ;;  %s391_s4 = int_to_ptr.vmem [resolvable:$true] %s390_s4 }
  0xe2   :  { %v188_v2 = vsel %vm114_vm0, %v187_v1, 0.0  ;;  %v295_v1 = vstv %s792_s30  ;;  %s551_s8 = scalar_lea.vmem %s391_s4, 128  ;;  %p556_p8 = scmp.lt.s32.totalorder %s391_s4, %s391_s4 }
  0xe3   :  { %p552_p7 = scmp.ne.s32.totalorder %s391_s4, %s551_s8  ;;  %p557_p9 = scmp.lt.s32.totalorder %s551_s8, %s551_s8 }
  0xe4   :  { %189 = vadd.xlane.f32.xlu1 %v188_v2 }
  0xe5   :  { %p558_p10 = por %p557_p9, %p556_p8 }
  0xe7   :  { %p559_p11 = pnand %p558_p10, %p552_p7 }
 0x169   :  { %v124_v3 = vpop.xlane.xlu0 %123 }
 0x16a   :  { %v125_v4 = vmul.f32 0.125, %v124_v3 }
 0x16c   :  { %v127_v5 = vadd.f32 1e-05, %v125_v4  ;;  %v303_v4 = vstv %s800_s9 }
 0x16d   :  { %v146_v6 = vpop.xlane.xlu1 %145  ;;  %v168_v7 = vpop.xlane.xlu0 %167 }
 0x16e   :  { %473 = vrsqrt.f32 %v127_v5  ;;  %v147_v8 = vmul.f32 0.125, %v146_v6  ;;  %v169_v9 = vmul.f32 0.125, %v168_v7  ;;  %v306_v5 = vstv %s802_s11 }
 0x170   :  { %v149_v10 = vadd.f32 1e-05, %v147_v8  ;;  %v171_v11 = vadd.f32 1e-05, %v169_v9 }
 0x171   :  { %v190_v12 = vpop.xlane.xlu1 %189 }
 0x172   :  { %475 = vrsqrt.f32 %v149_v10  ;;  %v191_v13 = vmul.f32 0.125, %v190_v12  ;;  %v314_v12 = vstv %s813_s12 }
 0x173   :  { %477 = vrsqrt.f32 %v171_v11 }
 0x174   :  { %v193_v14 = vadd.f32 1e-05, %v191_v13 }
 0x176   :  { %479 = vrsqrt.f32 %v193_v14 }
 0x178   :  { %v474_v24 = vpop.eup %473 }
 0x179   :  { %v130_v30 = vmul.f32 %v474_v24, %v129_v15 }
 0x17b   :  { %v132_v39 = vmul.f32 %v130_v30, %v699_v48  ;;  %v135_v55 = vmul.f32 %v130_v30, %v681_v28  ;;  %v300_v28 = vstv %s794_s5 }
 0x17c   :  { %v476_v44 = vpop.eup %475 }
 0x17d   :  { %v478_v52 = vpop.eup %477  ;;  %v134_v53 = vsub.f32 %v133_v16, %v132_v39  ;;  %v152_v48 = vmul.f32 %v476_v44, %v151_v20 }
 0x17e   :  { %v174_v57 = vmul.f32 %v478_v52, %v173_v22 }
 0x17f   :  { %v136_v62 = vadd.f32 %v135_v55, %v134_v53  ;;  %v154_v63 = vmul.f32 %v152_v48, %v707_v54  ;;  %v157_v8 = vmul.f32 %v152_v48, %v691_v42  ;;  %v310_v54 = vstv %s811_s0 }
 0x180   :  { %v480_v2 = vpop.eup %479  ;;  %v176_v3 = vmul.f32 %v174_v57, %v703_v51  ;;  %v179_v11 = vmul.f32 %v174_v57, %v687_v36 }
 0x181   :  { %v137_v6 = vmax.f32 %v136_v62, 0.0  ;;  %v156_v7 = vsub.f32 %v155_v21, %v154_v63  ;;  %v196_v9 = vmul.f32 %v480_v2, %v195_v25 }
 0x182   :  { %v178_v10 = vsub.f32 %v177_v23, %v176_v3 }
 0x183   :  { %v206_v13 = vmul.f32 %v205_v17, %v137_v6  ;;  %v225_v14 = vmul.f32 %v224_v18, %v137_v6  ;;  %v244_v51 = vmul.f32 %v243_v19, %v137_v6  ;;  %v158_v15 = vadd.f32 %v157_v8, %v156_v7 }
 0x184   :  { %v180_v16 = vadd.f32 %v179_v11, %v178_v10  ;;  %v198_v20 = vmul.f32 %v196_v9, %v712_v60  ;;  %v201_v42 = vmul.f32 %v196_v9, %v695_v45  ;;  %v263_v21 = vmul.f32 %v262_v29, %v137_v6 }
 0x185   :  { %v159_v22 = vmax.f32 %v158_v15, 0.0  ;;  %v209_v23 = vadd.f32 %v208_v27, %v206_v13  ;;  %v228_v36 = vadd.f32 %v227_v34, %v225_v14  ;;  %v247_v24 = vadd.f32 %v246_v37, %v244_v51 }
 0x186   :  { %v181_v25 = vmax.f32 %v180_v16, 0.0  ;;  %v200_v30 = vsub.f32 %v199_v26, %v198_v20  ;;  %v266_v17 = vadd.f32 %v265_v41, %v263_v21  ;;  %v282_v39 = vmul.f32 %v281_v58, %v137_v6 }
 0x187   :  { %v212_v18 = vmul.f32 %v211_v31, %v159_v22  ;;  %v231_v44 = vmul.f32 %v230_v32, %v159_v22  ;;  %v250_v19 = vmul.f32 %v249_v38, %v159_v22  ;;  %v269_v52 = vmul.f32 %v268_v43, %v159_v22 }
 0x188   :  { %v202_v53 = vadd.f32 %v201_v42, %v200_v30  ;;  %v216_v60 = vmul.f32 %v215_v33, %v181_v25  ;;  %v235_v45 = vmul.f32 %v234_v35, %v181_v25  ;;  %v254_v29 = vmul.f32 %v253_v40, %v181_v25 }
 0x189   :  { %v213_v27 = vadd.f32 %v212_v18, %v209_v23  ;;  %v232_v34 = vadd.f32 %v231_v44, %v228_v36  ;;  %v251_v37 = vadd.f32 %v250_v19, %v247_v24  ;;  %v270_v55 = vadd.f32 %v269_v52, %v266_v17 }
 0x18a   :  { %v203_v48 = vmax.f32 %v202_v53, 0.0  ;;  %v273_v26 = vmul.f32 %v272_v50, %v181_v25  ;;  %v285_v41 = vadd.f32 %v284_v59, %v282_v39  ;;  %v288_v57 = vmul.f32 %v287_v61, %v159_v22 }
 0x18b   :  { %v217_v31 = vadd.f32 %v216_v60, %v213_v27  ;;  %v236_v32 = vadd.f32 %v235_v45, %v232_v34  ;;  %v255_v38 = vadd.f32 %v254_v29, %v251_v37  ;;  %v292_v43 = vmul.f32 %v291_v0, %v181_v25 }
 0x18c   :  { %v220_v58 = vmul.f32 %v219_v46, %v203_v48  ;;  %v239_v33 = vmul.f32 %v238_v47, %v203_v48  ;;  %v258_v35 = vmul.f32 %v257_v49, %v203_v48  ;;  %v274_v62 = vadd.f32 %v273_v26, %v270_v55 }
 0x18d   :  { %v277_v40 = vmul.f32 %v276_v56, %v203_v48  ;;  %v289_v63 = vadd.f32 %v288_v57, %v285_v41  ;;  %v296_v2 = vmul.f32 %v295_v1, %v203_v48  ;;  %v301_v3 = vmul.f32 %v300_v28, %v137_v6 }
 0x18e   :  { %v221_v7 = vadd.f32 %v220_v58, %v217_v31  ;;  %v240_v8 = vadd.f32 %v239_v33, %v236_v32  ;;  %v259_v50 = vadd.f32 %v258_v35, %v255_v38  ;;  %v307_v59 = vmul.f32 %v306_v5, %v159_v22 }
 0x18f   :  { %v293_v61 = vadd.f32 %v292_v43, %v289_v63  ;;  %v304_v9 = vadd.f32 %v303_v4, %v301_v3  ;;  %v278_v0 = vadd.f32 %v277_v40, %v274_v62  ;;  %v311_v46 = vmul.f32 %v310_v54, %v181_v25 }
 0x190   :  { %v222_v10 = vmax.f32 %v221_v7, 0.0  ;;  %v241_v11 = vmax.f32 %v240_v8, 0.0  ;;  %v315_v14 = vmul.f32 %v314_v12, %v203_v48  ;;  %v260_v47 = vmax.f32 %v259_v50, 0.0 }
 0x191   :  { %v308_v13 = vadd.f32 %v307_v59, %v304_v9  ;;  %v297_v51 = vadd.f32 %v296_v2, %v293_v61  ;;  %v279_v56 = vmax.f32 %v278_v0, 0.0  ;;  %v381_v2 = vld [vmem:[#allocation7] sm:$0x3f] }
 0x192   :  { %v318_v49 = vmax.f32 %v222_v10, %v241_v11 }
 0x193   :  { %v312_v15 = vadd.f32 %v311_v46, %v308_v13  ;;  %v298_v28 = vmax.f32 %v297_v51, 0.0 }
 0x194   :  { %v319_v16 = vmax.f32 %v318_v49, %v260_v47 }
 0x195   :  { %v316_v1 = vadd.f32 %v315_v14, %v312_v15 }
 0x196   :  { %v320_v6 = vmax.f32 %v319_v16, %v279_v56 }
 0x197   :  { %v317_v20 = vmax.f32 %v316_v1, 0.0 }
 0x198   :  { %v321_v42 = vmax.f32 %v320_v6, %v298_v28 }
 0x19a   :  { %v322_v5 = vmax.f32 %v321_v42, %v317_v20 }
 0x19c   :  { %v323_v21 = vsub.f32 %v222_v10, %v322_v5  ;;  %v326_v4 = vsub.f32 %v241_v11, %v322_v5  ;;  %v329_v22 = vsub.f32 %v260_v47, %v322_v5  ;;  %v332_v23 = vsub.f32 %v279_v56, %v322_v5 }
 0x19d   :  { %v335_v12 = vsub.f32 %v298_v28, %v322_v5  ;;  %v338_v30 = vsub.f32 %v317_v20, %v322_v5 }
 0x19e   :  { %v324_v36 = vmul.f32 1.442695, %v323_v21  ;;  %v327_v24 = vmul.f32 1.442695, %v326_v4  ;;  %v330_v54 = vmul.f32 1.442695, %v329_v22 }
 0x19f   :  { %v333_v25 = vmul.f32 1.442695, %v332_v23  ;;  %v336_v17 = vmul.f32 1.442695, %v335_v12  ;;  %v339_v39 = vmul.f32 1.442695, %v338_v30 }
 0x1a0   :  { %481 = vpow2.f32 %v324_v36 }
 0x1a1   :  { %483 = vpow2.f32 %v327_v24 }
 0x1a2   :  { %485 = vpow2.f32 %v330_v54 }
 0x1a3   :  { %487 = vpow2.f32 %v333_v25 }
 0x1a4   :  { %489 = vpow2.f32 %v336_v17 }
 0x1a5   :  { %491 = vpow2.f32 %v339_v39 }
 0x1aa   :  { %v482_v18 = vpop.eup %481 }
 0x1ab   :  { %v484_v44 = vpop.eup %483 }
 0x1ac   :  { %v341_v19 = vadd.f32 %v484_v44, %v482_v18  ;;  %v486_v52 = vpop.eup %485 }
 0x1ad   :  { %v488_v60 = vpop.eup %487 }
 0x1ae   :  { %v342_v53 = vadd.f32 %v486_v52, %v341_v19  ;;  %v490_v29 = vpop.eup %489 }
 0x1af   :  { %v492_v34 = vpop.eup %491 }
 0x1b0   :  { %v343_v45 = vadd.f32 %v488_v60, %v342_v53 }
 0x1b2   :  { %v344_v27 = vadd.f32 %v490_v29, %v343_v45 }
 0x1b4   :  { %v345_v37 = vadd.f32 %v492_v34, %v344_v27 }
 0x1b6   :  { %493 = vrcp.f32 %v345_v37 }
 0x1c0   :  { %v494_v55 = vpop.eup %493 }
 0x1c1   :  { %v349_v48 = vmul.f32 %v494_v55, %v484_v44  ;;  %v350_v26 = vmul.f32 %v494_v55, %v486_v52  ;;  %v351_v41 = vmul.f32 %v494_v55, %v488_v60  ;;  %v352_v57 = vmul.f32 %v494_v55, %v490_v29 }
 0x1c2   :  { %v348_v31 = vmul.f32 %v494_v55, %v482_v18  ;;  %v353_v32 = vmul.f32 %v494_v55, %v492_v34 }
 0x1c3   :  { %v355_v38 = vrot.slane %v349_v48, 7  ;;  %v358_v43 = vrot.slane %v350_v26, 6  ;;  %v361_v58 = vrot.slane %v351_v41, 5  ;;  %v364_v35 = vrot.slane %v352_v57, 4 }
 0x1c4   :  { %v367_v40 = vrot.slane %v353_v32, 3 }
 0x1c5   :  { %v370_v33 = vsel %vm369_vm1, %v348_v31, %v355_v38 }
 0x1c6   :  { %v372_v62 = vsel %vm371_vm2, %v370_v33, %v358_v43 }
 0x1c7   :  { %v374_v63 = vsel %vm373_vm3, %v372_v62, %v361_v58 }
 0x1c8   :  { %v376_v3 = vsel %vm375_vm4, %v374_v63, %v364_v35 }
 0x1c9   :  { %v378_v7 = vsel %vm377_vm5, %v376_v3, %v367_v40 }
 0x1ca   :  { %380 = vst.msk [vmem:[#allocation9] sm:$0x3f] %vm379_vm6, %v378_v7  ;;  %v382_v8 = vadd.f32 %v381_v2, %v378_v7 }
 0x1cb   :  { %562 = shalt.err (!%p559_p11)
}
 0x1cc   :  { %s894_s15 = sld [smem:[#allocation18_spill]] }
 0x1d2   :  { %s563_s16 = scalar_lea.hbm %s894_s15, 128 }
 0x1d3   :  { %p564_p12 = scmp.ne.s32.totalorder %s894_s15, %s563_s16  ;;  %p567_p13 = scmp.lt.u32.totalorder %s563_s16, %s894_s15 }
 0x1d5   :  { %p569_p0 = pnand %p567_p13, %p564_p12 }
 0x1d7   :  { %572 = shalt.err (!%p569_p0)
}
 0x1d8   :  { %393 = dma.vmem_to_hbm [thread:$0]  %s391_s4, 128, %s894_s15, [#allocation4]   ;;  %383 = vst.msk [vmem:[#allocation10] sm:$0x3f] %vm379_vm6, %v382_v8 }
 0x1d9   :  { %s573_s23 = scalar_lea.vmem %s401_s7, 128  ;;  %p578_p2 = scmp.lt.s32.totalorder %s401_s7, %s401_s7 }
 0x1da   :  { %p574_p1 = scmp.ne.s32.totalorder %s401_s7, %s573_s23  ;;  %p579_p3 = scmp.lt.s32.totalorder %s573_s23, %s573_s23 }
 0x1dc   :  { %p580_p4 = por %p579_p3, %p578_p2 }
 0x1de   :  { %p581_p5 = pnand %p580_p4, %p574_p1 }
 0x1e0   :  { %584 = shalt.err (!%p581_p5)
}
 0x1e1   :  { %s895_s25 = sld [smem:[#allocation19_spill]] }
 0x1e7   :  { %s585_s26 = scalar_lea.hbm %s895_s25, 128 }
 0x1e8   :  { %p586_p6 = scmp.ne.s32.totalorder %s895_s25, %s585_s26  ;;  %p589_p7 = scmp.lt.u32.totalorder %s585_s26, %s895_s25 }
 0x1ea   :  { %p591_p8 = pnand %p589_p7, %p586_p6 }
 0x1ec   :  { %594 = shalt.err (!%p591_p8)
}
 0x1ed   :  { %403 = dma.vmem_to_hbm [thread:$0]  %s401_s7, 128, %s895_s25, [#allocation11]  }
 0x1ee   :  { %601 = dma.done.wait [#allocation4], 128  }
 0x1ef   :  { %602 = vsyncadd [#allocation4], 4294967168 }
 0x1f0   :  { %603 = dma.done.wait [#allocation11], 128  }
 0x1f1   :  { %604 = vsyncadd [#allocation11], 4294967168 }
 0x1f2   :  { %410 = vsyncpa [#allocation3], 1 }
 0x1f3   :  { %411 = vsyncpa [#allocation8], 1 }
 0x1f4   :  { %412 = vsyncpa [#allocation4], 1 }
 0x1f5   :  { %413 = vsyncpa [#allocation11], 1 }
 0x1f6   :  { %414 = vsyncpa [#allocation5], 1 }

</bundles_post_ra>
